<compile_context>
chip_gen: v5e
topology: v5e:2x2
jax: 0.10.0
libtpu: 0.0.40
codegen_flags: <defaults>
</compile_context>

<pallas_src>
import functools

import jax
import jax.numpy as jnp
from jax.experimental import pallas as pl
from jax.experimental.pallas import tpu as pltpu

LEAKY_SLOPE = 0.01      # nn.LeakyReLU default negative_slope
_LANE = 128             # lane (last-dim) granularity
_SUBLANE = 8            # sublane granularity for f32
_NEG_BIG = -1e30        # padded-class logit (softmax -> 0)


def _round_up(x, m):
    return (x + m - 1) // m * m


def _feature_pad(d):
    # Lane minimum is 128; 256-align larger dims so the 2x256^2 MXU (v6e/v7x)
    # sees full-width K/N slabs.  Small dims stay at 128 (ideal for v5e 4x128^2).
    return _round_up(d, 256) if d > 128 else _round_up(d, _LANE)


# ---------------------------------------------------------------------------
# Capability probe: single-buffering (pipeline_mode=pl.Buffered(1)) for the
# grid-constant weight/bias blocks.  If this JAX/Mosaic build rejects it we
# silently fall back to default double-buffering, so the kernel always runs.
# ---------------------------------------------------------------------------
def _probe_kernel(x_ref, w_ref, o_ref):
    o_ref[...] = x_ref[...] + w_ref[...]


@functools.lru_cache(maxsize=1)
def _buffered_one_supported():
    try:
        fn = pl.pallas_call(
            _probe_kernel,
            out_shape=jax.ShapeDtypeStruct((2 * _SUBLANE, _LANE), jnp.float32),
            grid=(2,),
            in_specs=[
                pl.BlockSpec((_SUBLANE, _LANE), lambda i: (i, 0),
                             memory_space=pltpu.MemorySpace.VMEM),
                pl.BlockSpec((_SUBLANE, _LANE), lambda i: (0, 0),
                             memory_space=pltpu.MemorySpace.VMEM,
                             pipeline_mode=pl.Buffered(1)),
            ],
            out_specs=pl.BlockSpec((_SUBLANE, _LANE), lambda i: (i, 0),
                                   memory_space=pltpu.MemorySpace.VMEM),
            compiler_params=pltpu.CompilerParams(
                dimension_semantics=("parallel",)),
        )
        x = jnp.zeros((2 * _SUBLANE, _LANE), jnp.float32)
        w = jnp.zeros((_SUBLANE, _LANE), jnp.float32)
        jax.jit(fn).lower(x, w).compile()
        return True
    except Exception:
        return False


def _vmem_cap_bytes():
    """~75% of physical VMEM; 64 MiB fallback (v7x-sized) if undetectable."""
    cap = 64 * 1024 * 1024
    try:
        info = pltpu.get_tpu_info()
        cap = int(getattr(info, "vmem_capacity_bytes", cap) or cap)
    except Exception:
        pass
    return cap * 3 // 4


# ---------------------------------------------------------------------------
# Kernel: whole MLP for one batch tile.  Activations never leave VMEM/vregs.
# ---------------------------------------------------------------------------
def _fused_mlp_kernel(*refs, num_layers):
    """refs = (x_ref, w_0, b_0, ..., w_{L-1}, b_{L-1}, o_ref).

    Weights are bf16 (MXU-native), biases f32.  The final layer's padded bias
    entries are -1e30 so padded classes get exactly zero probability without
    any in-kernel iota/mask.  All elementwise math is f32.
    """
    x_ref = refs[0]
    o_ref = refs[-1]
    wb = refs[1:-1]

    h = x_ref[...]                                           # (tile_m, in_p) f32
    for l in range(num_layers):
        w = wb[2 * l][...]                                   # (prev_p, out_p) bf16
        b = wb[2 * l + 1][...]                               # (1, out_p) f32
        y = jnp.dot(h.astype(jnp.bfloat16), w,
                    preferred_element_type=jnp.float32) + b  # f32 accumulate
        if l < num_layers - 1:
            h = jnp.where(y > 0, y, LEAKY_SLOPE * y)         # LeakyReLU (f32 VPU)
        else:
            # Numerically-stable softmax along the lane axis; padded logits are
            # -1e30, so exp underflows to 0 and they contribute nothing.
            m = jnp.max(y, axis=-1, keepdims=True)
            e = jnp.exp(y - m)
            denom = jnp.sum(e, axis=-1, keepdims=True)
            r = pl.reciprocal(denom, approx=True)            # EUP slot (nearly free)
            r = r * (2.0 - denom * r)                        # one Newton refinement
            h = e * r
    o_ref[...] = h.astype(o_ref.dtype)


# ---------------------------------------------------------------------------
# One-time parameter prep (call OUTSIDE jit, once per model).
# ---------------------------------------------------------------------------
def prep_mlp_params(params):
    """Pad feature dims to MXU/lane granularity, cast weights to bf16, keep
    biases f32, and set the final layer's bias padding to -1e30."""
    num_layers = len(params)
    prev_p = _feature_pad(params[0][0].shape[0])
    prepped = []
    for l, (w, b) in enumerate(params):
        fin, fout = w.shape
        fout_p = _feature_pad(fout)
        w_p = jnp.pad(w.astype(jnp.float32),
                      ((0, prev_p - fin), (0, fout_p - fout))
                      ).astype(jnp.bfloat16)
        pad_val = _NEG_BIG if l == num_layers - 1 else 0.0
        b_p = jnp.pad(b.astype(jnp.float32).reshape(1, fout),
                      ((0, 0), (0, fout_p - fout)),
                      constant_values=pad_val)
        prepped.append((w_p, b_p))
        prev_p = fout_p
    return prepped


# ---------------------------------------------------------------------------
# Forward wrapper.
# ---------------------------------------------------------------------------
def mlp_forward(x, padded_params, out_dim, *, tile_m=256):
    """Fused Pallas MLP forward.

    x: (batch, in_dim) f32.  padded_params: output of prep_mlp_params.
    out_dim: logical number of classes (static under jit)."""
    batch, in_dim = x.shape
    num_layers = len(padded_params)
    in_p = padded_params[0][0].shape[0]
    out_p = padded_params[-1][0].shape[1]
    assert in_dim <= in_p and out_dim <= out_p

    # Batch tiling: sublane-aligned; produce >= 2 tiles whenever the batch
    # allows it so dimension_semantics=("parallel",) can feed both v7x TCs.
    batch_p = _round_up(batch, _SUBLANE)
    tile_m = max(_SUBLANE, _round_up(min(tile_m, batch_p), _SUBLANE))
    if batch_p >= 2 * _SUBLANE and tile_m >= batch_p:
        tile_m = _round_up((batch_p + 1) // 2, _SUBLANE)
    batch_p = _round_up(batch_p, tile_m)
    n_tiles = batch_p // tile_m

    x_p = jnp.pad(x.astype(jnp.float32),
                  ((0, batch_p - batch), (0, in_p - in_dim)))

    buffered_ok = _buffered_one_supported()
    const_kwargs = dict(memory_space=pltpu.MemorySpace.VMEM)
    if buffered_ok:
        const_kwargs["pipeline_mode"] = pl.Buffered(1)   # weights never change per tile

    flat_inputs = [x_p]
    in_specs = [pl.BlockSpec((tile_m, in_p), lambda i: (i, 0),
                             memory_space=pltpu.MemorySpace.VMEM)]
    flops = 0
    weight_bytes = 0
    for (w_p, b_p) in padded_params:
        fin_p, fout_p = w_p.shape
        flat_inputs += [w_p, b_p]
        in_specs += [
            pl.BlockSpec((fin_p, fout_p), lambda i: (0, 0), **const_kwargs),
            pl.BlockSpec((1, fout_p), lambda i: (0, 0), **const_kwargs),
        ]
        flops += 2 * batch_p * fin_p * fout_p
        weight_bytes += (w_p.size * w_p.dtype.itemsize
                         + b_p.size * b_p.dtype.itemsize)

    # VMEM budget from the actual padded sizes: weights x1 (single-buffered) or
    # x2, in/out batch tiles x2 (pipeline double-buffers), plus headroom for
    # the softmax-epilogue temporaries / compiler scratch.
    wbuf = 1 if buffered_ok else 2
    need = wbuf * weight_bytes + 2 * tile_m * (in_p + out_p) * 4 + (4 << 20)
    vmem_limit = int(min(_vmem_cap_bytes(), max(need, 32 << 20)))

    kernel = functools.partial(_fused_mlp_kernel, num_layers=num_layers)

    out_padded = pl.pallas_call(
        kernel,
        out_shape=jax.ShapeDtypeStruct((batch_p, out_p), jnp.float32),
        grid=(n_tiles,),
        in_specs=in_specs,
        out_specs=pl.BlockSpec((tile_m, out_p), lambda i: (i, 0),
                               memory_space=pltpu.MemorySpace.VMEM),
        compiler_params=pltpu.CompilerParams(
            dimension_semantics=("parallel",),   # shard batch tiles across TCs
            vmem_limit_bytes=vmem_limit,
        ),
        cost_estimate=pl.CostEstimate(
            flops=flops,
            transcendentals=batch_p * out_p + batch_p,  # exp per logit + recip per row
            bytes_accessed=weight_bytes + (batch_p * in_p + batch_p * out_p) * 4,
        ),
    )(*flat_inputs)

    # Strip batch / class padding back to the logical shape.
    return out_padded[:batch, :out_dim]


# ---------------------------------------------------------------------------
# Params + pure-JAX reference (matches the PyTorch module semantics).
# ---------------------------------------------------------------------------
def init_mlp_params(key, input_size, hidden_size, output_size):
    """Deterministic params.  Weight stored (in, out); bias stored (1, out)."""
    sizes = [input_size] + list(hidden_size) + [output_size]
    params = []
    for i in range(len(sizes) - 1):
        key, kw, kb = jax.random.split(key, 3)
        fan_in = sizes[i]
        bound = 1.0 / jnp.sqrt(fan_in)   # nn.Linear default init range
        w = jax.random.uniform(kw, (sizes[i], sizes[i + 1]),
                               minval=-bound, maxval=bound, dtype=jnp.float32)
        b = jax.random.uniform(kb, (1, sizes[i + 1]),
                               minval=-bound, maxval=bound, dtype=jnp.float32)
        params.append((w, b))
    return params


def _ref_forward(x, params):
    h = x
    for i, (w, b) in enumerate(params):
        y = h @ w + b[0]
        if i < len(params) - 1:
            h = jnp.where(y > 0, y, LEAKY_SLOPE * y)
        else:
            h = jax.nn.softmax(y, axis=-1)
    return h


if __name__ == "__main__":
    key = jax.random.PRNGKey(0)

    batch = 2
    input_size = 32
    hidden_size = [64, 32]
    output_size = 16

    kx, kp = jax.random.split(key)
    x = jax.random.normal(kx, (batch, input_size), dtype=jnp.float32)
    params = init_mlp_params(kp, input_size, hidden_size, output_size)

    # One-time prep (pad + bf16 cast + -1e30 class padding) OUTSIDE the jit path.
    padded_params = prep_mlp_params(params)

    fwd = jax.jit(mlp_forward, static_argnames=("out_dim",))
    out = fwd(x, padded_params, out_dim=output_size)
    out = jax.block_until_ready(out)

    # sanity: shape, softmax rows sum to 1, matches pure-JAX f32 reference
    assert out.shape == (batch, output_size)
    assert jnp.allclose(jnp.sum(out, axis=-1), 1.0, atol=1e-3)
    ref = _ref_forward(x, params)
    # bf16 MXU inputs -> slightly looser tolerance vs the f32 reference
    assert jnp.allclose(out, ref, atol=2e-2, rtol=2e-2)

    print("KERNEL_OK")
</pallas_src>

<mosaic_0001>
module attributes {stable_mosaic.version = 11 : i64} {
  func.func @_fused_mlp_kernel(%arg0: i32, %arg1: memref<8x128xf32, #tpu.memory_space<vmem>>, %arg2: memref<128x128xbf16, #tpu.memory_space<vmem>>, %arg3: memref<1x128xf32, #tpu.memory_space<vmem>>, %arg4: memref<128x128xbf16, #tpu.memory_space<vmem>>, %arg5: memref<1x128xf32, #tpu.memory_space<vmem>>, %arg6: memref<128x128xbf16, #tpu.memory_space<vmem>>, %arg7: memref<1x128xf32, #tpu.memory_space<vmem>>, %arg8: memref<8x128xf32, #tpu.memory_space<vmem>>) attributes {dimension_semantics = [#tpu.dimension_semantics<parallel>], iteration_bounds = array<i64: 1>, scalar_prefetch = 0 : i64, scratch_operands = 0 : i64, tpu.core_type = #tpu.core_type<tc>, window_params = [{transform_indices = @transform_0, window_bounds = array<i64: 8, 128>}, {pipeline_mode = #tpu.pipeline_mode<synchronous>, transform_indices = @transform_1, window_bounds = array<i64: 128, 128>}, {pipeline_mode = #tpu.pipeline_mode<synchronous>, transform_indices = @transform_2, window_bounds = array<i64: 1, 128>}, {pipeline_mode = #tpu.pipeline_mode<synchronous>, transform_indices = @transform_3, window_bounds = array<i64: 128, 128>}, {pipeline_mode = #tpu.pipeline_mode<synchronous>, transform_indices = @transform_4, window_bounds = array<i64: 1, 128>}, {pipeline_mode = #tpu.pipeline_mode<synchronous>, transform_indices = @transform_5, window_bounds = array<i64: 128, 128>}, {pipeline_mode = #tpu.pipeline_mode<synchronous>, transform_indices = @transform_6, window_bounds = array<i64: 1, 128>}, {transform_indices = @transform_7, window_bounds = array<i64: 8, 128>}]} {
    %c0 = arith.constant 0 : index
    %c0_0 = arith.constant 0 : index
    %0 = vector.load %arg1[%c0, %c0_0] : memref<8x128xf32, #tpu.memory_space<vmem>>, vector<8x128xf32>
    %c0_1 = arith.constant 0 : index
    %c0_2 = arith.constant 0 : index
    %1 = vector.load %arg2[%c0_1, %c0_2] : memref<128x128xbf16, #tpu.memory_space<vmem>>, vector<128x128xbf16>
    %c0_3 = arith.constant 0 : index
    %c0_4 = arith.constant 0 : index
    %2 = vector.load %arg3[%c0_3, %c0_4] : memref<1x128xf32, #tpu.memory_space<vmem>>, vector<1x128xf32>
    %3 = arith.truncf %0 : vector<8x128xf32> to vector<8x128xbf16>
    %cst = arith.constant dense<0.000000e+00> : vector<8x128xf32>
    %4 = tpu.matmul %3, %1, %cst {dimension_numbers = #tpu.dot_dimension_numbers<[1], [0], [0], [1], [0, 0, 1, 1], [], []>} : vector<8x128xbf16>, vector<128x128xbf16>, vector<8x128xf32> -> vector<8x128xf32>
    %5 = vector.broadcast %2 : vector<1x128xf32> to vector<8x128xf32>
    %6 = arith.addf %4, %5 : vector<8x128xf32>
    %cst_5 = arith.constant 0.000000e+00 : f32
    %7 = vector.broadcast %cst_5 : f32 to vector<8x128xf32>
    %8 = arith.cmpf ogt, %6, %7 : vector<8x128xf32>
    %cst_6 = arith.constant 0.00999999977 : f32
    %9 = vector.broadcast %cst_6 : f32 to vector<8x128xf32>
    %10 = arith.mulf %9, %6 : vector<8x128xf32>
    %11 = arith.select %8, %6, %10 : vector<8x128xi1>, vector<8x128xf32>
    %c0_7 = arith.constant 0 : index
    %c0_8 = arith.constant 0 : index
    %12 = vector.load %arg4[%c0_7, %c0_8] : memref<128x128xbf16, #tpu.memory_space<vmem>>, vector<128x128xbf16>
    %c0_9 = arith.constant 0 : index
    %c0_10 = arith.constant 0 : index
    %13 = vector.load %arg5[%c0_9, %c0_10] : memref<1x128xf32, #tpu.memory_space<vmem>>, vector<1x128xf32>
    %14 = arith.truncf %11 : vector<8x128xf32> to vector<8x128xbf16>
    %cst_11 = arith.constant dense<0.000000e+00> : vector<8x128xf32>
    %15 = tpu.matmul %14, %12, %cst_11 {dimension_numbers = #tpu.dot_dimension_numbers<[1], [0], [0], [1], [0, 0, 1, 1], [], []>} : vector<8x128xbf16>, vector<128x128xbf16>, vector<8x128xf32> -> vector<8x128xf32>
    %16 = vector.broadcast %13 : vector<1x128xf32> to vector<8x128xf32>
    %17 = arith.addf %15, %16 : vector<8x128xf32>
    %cst_12 = arith.constant 0.000000e+00 : f32
    %18 = vector.broadcast %cst_12 : f32 to vector<8x128xf32>
    %19 = arith.cmpf ogt, %17, %18 : vector<8x128xf32>
    %cst_13 = arith.constant 0.00999999977 : f32
    %20 = vector.broadcast %cst_13 : f32 to vector<8x128xf32>
    %21 = arith.mulf %20, %17 : vector<8x128xf32>
    %22 = arith.select %19, %17, %21 : vector<8x128xi1>, vector<8x128xf32>
    %c0_14 = arith.constant 0 : index
    %c0_15 = arith.constant 0 : index
    %23 = vector.load %arg6[%c0_14, %c0_15] : memref<128x128xbf16, #tpu.memory_space<vmem>>, vector<128x128xbf16>
    %c0_16 = arith.constant 0 : index
    %c0_17 = arith.constant 0 : index
    %24 = vector.load %arg7[%c0_16, %c0_17] : memref<1x128xf32, #tpu.memory_space<vmem>>, vector<1x128xf32>
    %25 = arith.truncf %22 : vector<8x128xf32> to vector<8x128xbf16>
    %cst_18 = arith.constant dense<0.000000e+00> : vector<8x128xf32>
    %26 = tpu.matmul %25, %23, %cst_18 {dimension_numbers = #tpu.dot_dimension_numbers<[1], [0], [0], [1], [0, 0, 1, 1], [], []>} : vector<8x128xbf16>, vector<128x128xbf16>, vector<8x128xf32> -> vector<8x128xf32>
    %27 = vector.broadcast %24 : vector<1x128xf32> to vector<8x128xf32>
    %28 = arith.addf %26, %27 : vector<8x128xf32>
    %cst_19 = arith.constant dense<0xFF800000> : vector<8xf32>
    %29 = vector.multi_reduction <maximumf>, %28, %cst_19 [1] : vector<8x128xf32> to vector<8xf32>
    %30 = vector.shape_cast %29 : vector<8xf32> to vector<8x1xf32>
    %31 = vector.broadcast %30 : vector<8x1xf32> to vector<8x128xf32>
    %32 = arith.subf %28, %31 : vector<8x128xf32>
    %33 = math.exp %32 : vector<8x128xf32>
    %cst_20 = arith.constant dense<0.000000e+00> : vector<8xf32>
    %34 = vector.multi_reduction <add>, %33, %cst_20 [1] : vector<8x128xf32> to vector<8xf32>
    %35 = vector.shape_cast %34 : vector<8xf32> to vector<8x1xf32>
    %36 = tpu.reciprocal %35 {approx = true} : vector<8x1xf32> -> vector<8x1xf32>
    %37 = arith.mulf %35, %36 : vector<8x1xf32>
    %cst_21 = arith.constant 2.000000e+00 : f32
    %38 = vector.broadcast %cst_21 : f32 to vector<8x1xf32>
    %39 = arith.subf %38, %37 : vector<8x1xf32>
    %40 = arith.mulf %36, %39 : vector<8x1xf32>
    %41 = vector.broadcast %40 : vector<8x1xf32> to vector<8x128xf32>
    %42 = arith.mulf %33, %41 : vector<8x128xf32>
    %c0_22 = arith.constant 0 : index
    %c0_23 = arith.constant 0 : index
    %43 = vector.load %arg8[%c0_22, %c0_23] : memref<8x128xf32, #tpu.memory_space<vmem>>, vector<8x128xf32>
    tpu.vector_store %arg8[%c0_22, %c0_23], %42 {strides = array<i32>} : memref<8x128xf32, #tpu.memory_space<vmem>>, vector<8x128xf32>,
    return
  }
  func.func @transform_0(%arg0: i32) -> (i32, i32) {
    %c0_i32 = arith.constant 0 : i32
    %c0_i32_0 = arith.constant 0 : i32
    return %arg0, %c0_i32 : i32, i32
  }
  func.func @transform_1(%arg0: i32) -> (i32, i32) {
    %c0_i32 = arith.constant 0 : i32
    %c0_i32_0 = arith.constant 0 : i32
    %c0_i32_1 = arith.constant 0 : i32
    return %c0_i32, %c0_i32_0 : i32, i32
  }
  func.func @transform_2(%arg0: i32) -> (i32, i32) {
    %c0_i32 = arith.constant 0 : i32
    %c0_i32_0 = arith.constant 0 : i32
    %c0_i32_1 = arith.constant 0 : i32
    return %c0_i32, %c0_i32_0 : i32, i32
  }
  func.func @transform_3(%arg0: i32) -> (i32, i32) {
    %c0_i32 = arith.constant 0 : i32
    %c0_i32_0 = arith.constant 0 : i32
    %c0_i32_1 = arith.constant 0 : i32
    return %c0_i32, %c0_i32_0 : i32, i32
  }
  func.func @transform_4(%arg0: i32) -> (i32, i32) {
    %c0_i32 = arith.constant 0 : i32
    %c0_i32_0 = arith.constant 0 : i32
    %c0_i32_1 = arith.constant 0 : i32
    return %c0_i32, %c0_i32_0 : i32, i32
  }
  func.func @transform_5(%arg0: i32) -> (i32, i32) {
    %c0_i32 = arith.constant 0 : i32
    %c0_i32_0 = arith.constant 0 : i32
    %c0_i32_1 = arith.constant 0 : i32
    return %c0_i32, %c0_i32_0 : i32, i32
  }
  func.func @transform_6(%arg0: i32) -> (i32, i32) {
    %c0_i32 = arith.constant 0 : i32
    %c0_i32_0 = arith.constant 0 : i32
    %c0_i32_1 = arith.constant 0 : i32
    return %c0_i32, %c0_i32_0 : i32, i32
  }
  func.func @transform_7(%arg0: i32) -> (i32, i32) {
    %c0_i32 = arith.constant 0 : i32
    %c0_i32_0 = arith.constant 0 : i32
    return %arg0, %c0_i32 : i32, i32
  }
}

</mosaic_0001>

<bundles_post_ra>
// kernel: mlp_forward.1
= control target key start
LH: loop header
LB: loop body
LE: loop exit
PB: predicated region body
PF: predicated region fallthrough
CT: control target
= control target key end

     0   :  { %12 = vsyncpa [#allocation3], 0  ;;  %s622_s0 = inlined_call_operand.vmem [shape: f32[8,128], index: 0, kind: input, shape index: {}]   ;;  %s623_s1 = inlined_call_operand.hbm [shape: bf16[128,128], index: 1, kind: input, shape index: {}]   ;;  %s624_s2 = inlined_call_operand.vmem [shape: f32[1,128], index: 2, kind: input, shape index: {}]   ;;  %s625_s3 = inlined_call_operand.hbm [shape: bf16[128,128], index: 3, kind: input, shape index: {}]   ;;  %s626_s4 = inlined_call_operand.vmem [shape: f32[1,128], index: 4, kind: input, shape index: {}]   ;;  %s627_s5 = inlined_call_operand.hbm [shape: bf16[128,128], index: 5, kind: input, shape index: {}]   ;;  %s628_s6 = inlined_call_operand.vmem [shape: f32[1,128], index: 6, kind: input, shape index: {}]   ;;  %s629_s7 = inlined_call_operand.vmem [shape: f32[8,128], index: 7, kind: output, shape index: {}]  }
   0x1   :  { %13 = vsyncpa [#allocation5], 0  ;;  %s35_s26 = sshll.u32 %s625_s3, 4  ;;  %s553_s27 = smov [#allocation4]   ;;  %s36_s26 = int_to_ptr.hbm [resolvable:$true] %s35_s26 }
   0x2   :  { %s37_s28 = sshll.u32 %s553_s27, 4  ;;  %s20_s8 = sshll.u32 %s623_s1, 4  ;;  %s38_s28 = int_to_ptr.vmem [resolvable:$true] %s37_s28  ;;  %s21_s8 = int_to_ptr.hbm [resolvable:$true] %s20_s8 }
   0x3   :  { %s554_s9 = smov 64   ;;  %s555_s10 = smov 4  }
   0x4   :  { %43 = dma.hbm_to_vmem [thread:$0]  %s36_s26, 1024, %s38_s28, [#allocation5], %s554_s9, %s554_s9, %s555_s10  }
   0x5   :  { %s556_s11 = smov [#allocation2]   ;;  %s50_s15 = sshll.u32 %s627_s5, 4  ;;  %s51_s15 = int_to_ptr.hbm [resolvable:$true] %s50_s15 }
   0x6   :  { %s22_s12 = sshll.u32 %s556_s11, 4  ;;  %s557_s3 = smov [#allocation6]   ;;  %s23_s12 = int_to_ptr.vmem [resolvable:$true] %s22_s12 }
   0x7   :  { %28 = dma.hbm_to_vmem [thread:$0]  %s21_s8, 1024, %s23_s12, [#allocation3], %s554_s9, %s554_s9, %s555_s10  }
   0x8   :  { %s52_s16 = sshll.u32 %s557_s3, 4  ;;  %s53_s16 = int_to_ptr.vmem [resolvable:$true] %s52_s16 }
   0x9   :  { %58 = dma.hbm_to_vmem [thread:$0]  %s51_s15, 1024, %s53_s16, [#allocation5], %s554_s9, %s554_s9, %s555_s10  }
   0xa   :  { %549 = dma.done.wait [#allocation3], 1024  }
   0xb   :  { %550 = vsyncadd [#allocation3], 4294966272 }
   0xc   :  { %551 = dma.done.wait [#allocation5], 2048  }
   0xd   :  { %552 = vsyncadd [#allocation5], 4294965248  ;;  %v448_v0 = vld [vmem:[#allocation2 + $0x38] sm:$0xff]  ;;  %v447_v1 = vld [vmem:[#allocation2 + $0x30] sm:$0xff] }
   0xe   :  { %143 = vmatpush.bf16.msra.mxu0 %v448_v0  ;;  %v456_v2 = vld [vmem:[#allocation4 + $0x38] sm:$0xff]  ;;  %v455_v3 = vld [vmem:[#allocation4 + $0x30] sm:$0xff]  ;;  %v446_v4 = vld [vmem:[#allocation2 + $0x28] sm:$0xff] }
   0xf   :  { %228 = vmatpush.bf16.msra.mxu1 %v456_v2  ;;  %v454_v5 = vld [vmem:[#allocation4 + $0x28] sm:$0xff]  ;;  %v445_v6 = vld [vmem:[#allocation2 + $0x20] sm:$0xff]  ;;  %v444_v8 = vld [vmem:[#allocation2 + $0x18] sm:$0xff] }
  0x10   :  { %v453_v7 = vld [vmem:[#allocation4 + $0x20] sm:$0xff]  ;;  %v452_v9 = vld [vmem:[#allocation4 + $0x18] sm:$0xff]  ;;  %v443_v10 = vld [vmem:[#allocation2 + $0x10] sm:$0xff] }
  0x11   :  { %v451_v11 = vld [vmem:[#allocation4 + $0x10] sm:$0xff]  ;;  %v442_v12 = vld [vmem:[#allocation2 + $0x8] sm:$0xff]  ;;  %v441_v13 = vld [vmem:[#allocation2] sm:$0xff] }
  0x12   :  { %144 = vmatpush.bf16.msra.mxu0 %v447_v1  ;;  %v73_v14 = vld [vmem:[%s622_s0] sm:$0xff]  ;;  %v450_v16 = vld [vmem:[#allocation4 + $0x8] sm:$0xff]  ;;  %v464_v18 = vld [vmem:[#allocation6 + $0x38] sm:$0xff] }
  0x13   :  { %229 = vmatpush.bf16.msra.mxu1 %v455_v3  ;;  %v91_v15 = vpack.c.bf16 %v73_v14, %v73_v14  ;;  %v449_v17 = vld [vmem:[#allocation4] sm:$0xff]  ;;  %313 = vmatpush.bf16.msra.mxu2 %v464_v18  ;;  %v463_v19 = vld [vmem:[#allocation6 + $0x30] sm:$0xff]  ;;  %v462_v20 = vld [vmem:[#allocation6 + $0x28] sm:$0xff] }
  0x14   :  { %v461_v21 = vld [vmem:[#allocation6 + $0x20] sm:$0xff]  ;;  %v460_v22 = vld [vmem:[#allocation6 + $0x18] sm:$0xff]  ;;  %v459_v23 = vld [vmem:[#allocation6 + $0x10] sm:$0xff] }
  0x15   :  { %v470_v24 = vld [vmem:[%s624_s2] ss:$0 sm:$0xff]  ;;  %v458_v31 = vld [vmem:[#allocation6 + $0x8] sm:$0xff] }
  0x16   :  { %145 = vmatpush.bf16.msra.mxu0 %v446_v4  ;;  %v457_v32 = vld [vmem:[#allocation6] sm:$0xff] }
  0x17   :  { %230 = vmatpush.bf16.msra.mxu1 %v454_v5  ;;  %314 = vmatpush.bf16.msra.mxu2 %v463_v19  ;;  %v471_v33 = vld [vmem:[%s626_s4] ss:$0 sm:$0xff] }
  0x18   :  { %v472_v40 = vld [vmem:[%s628_s6] ss:$0 sm:$0xff] }
  0x1a   :  { %146 = vmatpush.bf16.msra.mxu0 %v445_v6 }
  0x1b   :  { %231 = vmatpush.bf16.msra.mxu1 %v453_v7  ;;  %315 = vmatpush.bf16.msra.mxu2 %v462_v20 }
  0x1e   :  { %147 = vmatpush.bf16.msra.mxu0 %v444_v8 }
  0x1f   :  { %232 = vmatpush.bf16.msra.mxu1 %v452_v9  ;;  %316 = vmatpush.bf16.msra.mxu2 %v461_v21 }
  0x22   :  { %148 = vmatpush.bf16.msra.mxu0 %v443_v10 }
  0x23   :  { %233 = vmatpush.bf16.msra.mxu1 %v451_v11  ;;  %317 = vmatpush.bf16.msra.mxu2 %v460_v22 }
  0x26   :  { %149 = vmatpush.bf16.msra.mxu0 %v442_v12 }
  0x27   :  { %234 = vmatpush.bf16.msra.mxu1 %v450_v16  ;;  %318 = vmatpush.bf16.msra.mxu2 %v459_v23 }
  0x2a   :  { %150 = vmatpush.bf16.msra.mxu0 %v441_v13 }
  0x2b   :  { %235 = vmatpush.bf16.msra.mxu1 %v449_v17  ;;  %319 = vmatpush.bf16.msra.mxu2 %v458_v31 }
  0x2d   :  { %151 = vmatmul.bf16.vlgmr.msra.gmra.mxu0 %v91_v15 }
  0x2f   :  { %320 = vmatpush.bf16.msra.mxu2 %v457_v32 }
  0xaa   :  { %v152_v25 = vpop.f32.mrf.mxu0 }
  0xab   :  { %v153_v26 = vadd.f32 %v470_v24, %v152_v25 }
  0xad   :  { %v157_v27 = vmul.f32 0.01, %v153_v26  ;;  %vm156_vm0 = vcmp.gt.f32.partialorder %v153_v26, 0.0 }
  0xaf   :  { %v158_v28 = vsel %vm156_vm0, %v153_v26, %v157_v27 }
  0xb0   :  { %v176_v29 = vpack.c.bf16 %v158_v28, %v158_v28 }
  0xb2   :  { %v154_v30 = vpop.f32.mrf.mxu0  ;;  %236 = vmatmul.bf16.vlgmr.msra.gmra.mxu1 %v176_v29 }
 0x12f   :  { %v237_v34 = vpop.f32.mrf.mxu1 }
 0x130   :  { %v238_v35 = vadd.f32 %v471_v33, %v237_v34 }
 0x132   :  { %v242_v36 = vmul.f32 0.01, %v238_v35  ;;  %vm241_vm1 = vcmp.gt.f32.partialorder %v238_v35, 0.0 }
 0x134   :  { %v243_v37 = vsel %vm241_vm1, %v238_v35, %v242_v36 }
 0x135   :  { %v261_v38 = vpack.c.bf16 %v243_v37, %v243_v37 }
 0x137   :  { %v239_v39 = vpop.f32.mrf.mxu1  ;;  %321 = vmatmul.bf16.vlgmr.msra.gmra.mxu2 %v261_v38 }
 0x1ba   :  { %v322_v41 = vpop.f32.mrf.mxu2 }
 0x1bb   :  { %v323_v42 = vadd.f32 %v472_v40, %v322_v41 }
 0x1bd   :  { %326 = vmax.xlane.f32.xlu0 %v323_v42 }
 0x1c2   :  { %v324_v43 = vpop.f32.mrf.mxu2 }
 0x230   :  { %v327_v44 = vpop.xlane.xlu0 %326 }
 0x231   :  { %v328_v45 = vsub.f32 %v323_v42, %v327_v44 }
 0x233   :  { %v329_v46 = vmul.f32 1.442695, %v328_v45 }
 0x235   :  { %473 = vpow2.f32 %v329_v46 }
 0x23b   :  { %v474_v47 = vpop.eup %473 }
 0x23c   :  { %331 = vadd.xlane.f32.xlu0 %v474_v47 }
 0x2af   :  { %v332_v48 = vpop.xlane.xlu0 %331 }
 0x2b0   :  { %475 = vrcp.f32 %v332_v48 }
 0x2b6   :  { %v476_v49 = vpop.eup %475 }
 0x2b7   :  { %v334_v50 = vmul.f32 %v476_v49, %v332_v48 }
 0x2b9   :  { %v335_v51 = vsub.f32 2.0, %v334_v50 }
 0x2bb   :  { %v336_v52 = vmul.f32 %v476_v49, %v335_v51 }
 0x2bd   :  { %v337_v53 = vmul.f32 %v474_v47, %v336_v52 }
 0x2bf   :  { %338 = vst [vmem:[%s629_s7] sm:$0xff] %v337_v53 }
 0x2c0   :  { %343 = vsyncpa [#allocation3], 1 }
 0x2c1   :  { %344 = vsyncpa [#allocation5], 1 }

</bundles_post_ra>
